<compile_context>
chip_gen: v7x
topology: tpu7x:2x2x1
jax: 0.10.0
libtpu: 0.0.40
codegen_flags: <defaults>
</compile_context>

<pallas_src>
import functools
import math

import jax
import jax.numpy as jnp
from jax import lax
from jax.experimental import pallas as pl
from jax.experimental.pallas import tpu as pltpu

LANE = 128
SUBLANE = 8


def _round_up(n: int, m: int) -> int:
    return ((n + m - 1) // m) * m


def _mlp_kernel(x_ref, w1_ref, b1_ref, w2_ref, b2_ref, o_ref):
    # x_ref : (TM, IN)        f32  (cast to bf16 in-register just before the MXU)
    # w1_ref: (IN, HID_P)     bf16 (pre-transposed, zero-padded hidden)
    # b1_ref: (1, HID_P)      f32
    # w2_ref: (HID_P, CLS_P)  bf16 (pre-transposed, zero-padded)
    # b2_ref: (1, CLS_P)      f32
    # o_ref : (TM, CLS_P)     f32  (lane-dense: CLS_P is a multiple of 128)
    x = x_ref[...].astype(jnp.bfloat16)                       # VPU cast, feeds MXU
    h = jnp.dot(x, w1_ref[...], preferred_element_type=jnp.float32)
    h = jnp.maximum(h + b1_ref[...], 0.0)                     # bias + ReLU in f32
    logits = jnp.dot(h.astype(jnp.bfloat16), w2_ref[...],
                     preferred_element_type=jnp.float32)
    o_ref[...] = (logits + b2_ref[...]).astype(o_ref.dtype)


def _pick_tile_m(batch: int, tile_m: int) -> int:
    """Row-tile size: big tiles, but >=2 grid steps when possible (v7x megacore)."""
    b_sub = _round_up(max(batch, 1), SUBLANE)
    tm = min(tile_m, b_sub)
    if b_sub >= 2 * SUBLANE:
        # Guarantee at least two row tiles so the "parallel" axis can shard
        # across both TensorCores on v7x.
        tm = min(tm, _round_up(pl.cdiv(b_sub, 2), SUBLANE))
    return max(tm, SUBLANE)


@functools.partial(jax.jit, static_argnames=("tile_m",))
def classification_model_forward(x_nchw, w1, b1, w2, b2, *, tile_m: int = 512):
    """Forward pass of ClassificationModel (Flatten -> Linear -> ReLU -> Linear).

    x_nchw : (B, C, H, W) float32
    w1     : (HIDDEN, C*H*W)   -- PyTorch Linear weight layout (out, in)
    b1     : (HIDDEN,)
    w2     : (NUM_CLASSES, HIDDEN)
    b2     : (NUM_CLASSES,)
    returns: (B, NUM_CLASSES) float32 logits
    """
    B = x_nchw.shape[0]
    in_features = math.prod(x_nchw.shape[1:])      # host arithmetic
    hidden = w1.shape[0]
    num_classes = w2.shape[0]

    hid_p = _round_up(hidden, LANE)
    cls_p = _round_up(num_classes, LANE)
    tm = _pick_tile_m(B, tile_m)
    grid = (pl.cdiv(B, tm),)                       # ragged last tile, no batch pad

    # --- activations: free layout-only reshape, no pad, no dtype copy ---
    x2d = x_nchw.reshape(B, in_features)

    # --- weights: pad + transpose + bf16 cast (load-time work in a real model) ---
    w1_t = jnp.pad(w1, ((0, hid_p - hidden), (0, 0))).astype(jnp.bfloat16).T
    b1_p = jnp.pad(b1, (0, hid_p - hidden)).reshape(1, hid_p).astype(jnp.float32)
    w2_t = jnp.pad(
        w2, ((0, cls_p - num_classes), (0, hid_p - hidden))
    ).astype(jnp.bfloat16).T
    b2_p = jnp.pad(b2, (0, cls_p - num_classes)).reshape(1, cls_p).astype(jnp.float32)
    # Zero-padded hidden units stay exactly 0 through bias+ReLU; zero-padded
    # class columns produce 0 logits that are sliced off -> semantics unchanged.

    # VMEM budget: double-buffered x/out tiles + resident (double-buffered) weights.
    need = (2 * tm * in_features * 4            # x tile, f32
            + 2 * tm * cls_p * 4                # out tile, f32
            + 2 * (in_features * hid_p * 2      # W1, bf16
                   + hid_p * cls_p * 2          # W2, bf16
                   + hid_p * 4 + cls_p * 4))    # biases, f32
    vmem_limit = int(min(64 << 20, max(2 * need, 32 << 20)))   # <=64MiB: valid on v7x

    out_padded = pl.pallas_call(
        _mlp_kernel,
        out_shape=jax.ShapeDtypeStruct((B, cls_p), jnp.float32),
        grid_spec=pl.GridSpec(
            grid=grid,
            in_specs=[
                pl.BlockSpec((tm, in_features), lambda i: (i, 0)),     # x: row tiles
                pl.BlockSpec((in_features, hid_p), lambda i: (0, 0)),  # W1^T resident
                pl.BlockSpec((1, hid_p), lambda i: (0, 0)),            # b1 resident
                pl.BlockSpec((hid_p, cls_p), lambda i: (0, 0)),        # W2^T resident
                pl.BlockSpec((1, cls_p), lambda i: (0, 0)),            # b2 resident
            ],
            out_specs=pl.BlockSpec((tm, cls_p), lambda i: (i, 0)),     # lane-dense
        ),
        compiler_params=pltpu.CompilerParams(
            dimension_semantics=("parallel",),   # row tiles shard across TCs (v7x)
            vmem_limit_bytes=vmem_limit,
        ),
    )(x2d, w1_t, b1_p, w2_t, b2_p)

    return out_padded[:, :num_classes]


def _reference_forward_f32(x_nchw, w1, b1, w2, b2):
    B = x_nchw.shape[0]
    x2d = x_nchw.reshape(B, -1)
    h = jnp.maximum(x2d @ w1.T + b1, 0.0)
    return h @ w2.T + b2


def _reference_forward_bf16(x_nchw, w1, b1, w2, b2):
    # Matches the kernel numerics: bf16 matmul inputs, f32 accumulation,
    # f32 bias/ReLU.
    B = x_nchw.shape[0]
    x2d = x_nchw.reshape(B, -1).astype(jnp.bfloat16)
    h = lax.dot_general(
        x2d, w1.astype(jnp.bfloat16),
        dimension_numbers=(((1,), (1,)), ((), ())),
        preferred_element_type=jnp.float32,
    )
    h = jnp.maximum(h + b1, 0.0)
    logits = lax.dot_general(
        h.astype(jnp.bfloat16), w2.astype(jnp.bfloat16),
        dimension_numbers=(((1,), (1,)), ((), ())),
        preferred_element_type=jnp.float32,
    )
    return logits + b2


def _check(x, w1, b1, w2, b2):
    logits = jax.block_until_ready(classification_model_forward(x, w1, b1, w2, b2))
    assert logits.shape == (x.shape[0], w2.shape[0])
    ref_bf16 = _reference_forward_bf16(x, w1, b1, w2, b2)
    assert jnp.allclose(logits, ref_bf16, atol=1e-2, rtol=1e-2)
    ref_f32 = _reference_forward_f32(x, w1, b1, w2, b2)
    assert jnp.allclose(logits, ref_f32, atol=5e-2, rtol=5e-2)
    return logits


if __name__ == "__main__":
    # Small shapes consistent with the forward: batch=2, channels=4, spatial=16.
    B, C, H, W = 2, 4, 16, 16
    HIDDEN, NUM_CLASSES = 32, 10
    in_features = C * H * W

    key = jax.random.PRNGKey(0)
    k_x, k_w1, k_b1, k_w2, k_b2, k_x2 = jax.random.split(key, 6)

    x = jax.random.normal(k_x, (B, C, H, W), dtype=jnp.float32)
    # Deterministic parameter init (roughly PyTorch Linear's uniform scale).
    lim1 = 1.0 / math.sqrt(in_features)
    lim2 = 1.0 / math.sqrt(HIDDEN)
    w1 = jax.random.uniform(k_w1, (HIDDEN, in_features), jnp.float32, -lim1, lim1)
    b1 = jax.random.uniform(k_b1, (HIDDEN,), jnp.float32, -lim1, lim1)
    w2 = jax.random.uniform(k_w2, (NUM_CLASSES, HIDDEN), jnp.float32, -lim2, lim2)
    b2 = jax.random.uniform(k_b2, (NUM_CLASSES,), jnp.float32, -lim2, lim2)

    _check(x, w1, b1, w2, b2)                       # single ragged tile (B=2)

    # Also exercise the multi-tile + ragged-last-tile path (2 row tiles, B=20).
    x_big = jax.random.normal(k_x2, (20, C, H, W), dtype=jnp.float32)
    _check(x_big, w1, b1, w2, b2)

    # TODO(synk): shared_step's replay-buffer bookkeeping / batch_loss_fn /
    # Observations unwrapping are host-side training logic with no kernel
    # equivalent; only forward()'s module pipeline is implemented here.
    print("KERNEL_OK")
</pallas_src>

<mosaic_0001>
module attributes {stable_mosaic.version = 11 : i64} {
  func.func @_mlp_kernel(%arg0: i32, %arg1: memref<8x1024xf32, #tpu.memory_space<vmem>>, %arg2: memref<1024x128xbf16, #tpu.memory_space<vmem>>, %arg3: memref<1x128xf32, #tpu.memory_space<vmem>>, %arg4: memref<128x128xbf16, #tpu.memory_space<vmem>>, %arg5: memref<1x128xf32, #tpu.memory_space<vmem>>, %arg6: memref<8x128xf32, #tpu.memory_space<vmem>>) attributes {dimension_semantics = [#tpu.dimension_semantics<parallel>], iteration_bounds = array<i64: 1>, scalar_prefetch = 0 : i64, scratch_operands = 0 : i64, tpu.core_type = #tpu.core_type<tc>, window_params = [{transform_indices = @transform_0, window_bounds = array<i64: 8, 1024>}, {pipeline_mode = #tpu.pipeline_mode<synchronous>, transform_indices = @transform_1, window_bounds = array<i64: 1024, 128>}, {pipeline_mode = #tpu.pipeline_mode<synchronous>, transform_indices = @transform_2, window_bounds = array<i64: 1, 128>}, {pipeline_mode = #tpu.pipeline_mode<synchronous>, transform_indices = @transform_3, window_bounds = array<i64: 128, 128>}, {pipeline_mode = #tpu.pipeline_mode<synchronous>, transform_indices = @transform_4, window_bounds = array<i64: 1, 128>}, {transform_indices = @transform_5, window_bounds = array<i64: 8, 128>}]} {
    %c0 = arith.constant 0 : index
    %c0_0 = arith.constant 0 : index
    %0 = vector.load %arg1[%c0, %c0_0] : memref<8x1024xf32, #tpu.memory_space<vmem>>, vector<8x1024xf32>
    %1 = arith.truncf %0 : vector<8x1024xf32> to vector<8x1024xbf16>
    %c0_1 = arith.constant 0 : index
    %c0_2 = arith.constant 0 : index
    %2 = vector.load %arg2[%c0_1, %c0_2] : memref<1024x128xbf16, #tpu.memory_space<vmem>>, vector<1024x128xbf16>
    %cst = arith.constant dense<0.000000e+00> : vector<8x128xf32>
    %3 = tpu.matmul %1, %2, %cst {dimension_numbers = #tpu.dot_dimension_numbers<[1], [0], [0], [1], [0, 0, 1, 1], [], []>} : vector<8x1024xbf16>, vector<1024x128xbf16>, vector<8x128xf32> -> vector<8x128xf32>
    %c0_3 = arith.constant 0 : index
    %c0_4 = arith.constant 0 : index
    %4 = vector.load %arg3[%c0_3, %c0_4] : memref<1x128xf32, #tpu.memory_space<vmem>>, vector<1x128xf32>
    %5 = vector.broadcast %4 : vector<1x128xf32> to vector<8x128xf32>
    %6 = arith.addf %3, %5 : vector<8x128xf32>
    %cst_5 = arith.constant 0.000000e+00 : f32
    %7 = vector.broadcast %cst_5 : f32 to vector<8x128xf32>
    %8 = arith.maximumf %6, %7 : vector<8x128xf32>
    %9 = arith.truncf %8 : vector<8x128xf32> to vector<8x128xbf16>
    %c0_6 = arith.constant 0 : index
    %c0_7 = arith.constant 0 : index
    %10 = vector.load %arg4[%c0_6, %c0_7] : memref<128x128xbf16, #tpu.memory_space<vmem>>, vector<128x128xbf16>
    %cst_8 = arith.constant dense<0.000000e+00> : vector<8x128xf32>
    %11 = tpu.matmul %9, %10, %cst_8 {dimension_numbers = #tpu.dot_dimension_numbers<[1], [0], [0], [1], [0, 0, 1, 1], [], []>} : vector<8x128xbf16>, vector<128x128xbf16>, vector<8x128xf32> -> vector<8x128xf32>
    %c0_9 = arith.constant 0 : index
    %c0_10 = arith.constant 0 : index
    %12 = vector.load %arg5[%c0_9, %c0_10] : memref<1x128xf32, #tpu.memory_space<vmem>>, vector<1x128xf32>
    %13 = vector.broadcast %12 : vector<1x128xf32> to vector<8x128xf32>
    %14 = arith.addf %11, %13 : vector<8x128xf32>
    %c0_11 = arith.constant 0 : index
    %c0_12 = arith.constant 0 : index
    %15 = vector.load %arg6[%c0_11, %c0_12] : memref<8x128xf32, #tpu.memory_space<vmem>>, vector<8x128xf32>
    tpu.vector_store %arg6[%c0_11, %c0_12], %14 {strides = array<i32>} : memref<8x128xf32, #tpu.memory_space<vmem>>, vector<8x128xf32>,
    return
  }
  func.func @transform_0(%arg0: i32) -> (i32, i32) {
    %c0_i32 = arith.constant 0 : i32
    %c0_i32_0 = arith.constant 0 : i32
    return %arg0, %c0_i32 : i32, i32
  }
  func.func @transform_1(%arg0: i32) -> (i32, i32) {
    %c0_i32 = arith.constant 0 : i32
    %c0_i32_0 = arith.constant 0 : i32
    %c0_i32_1 = arith.constant 0 : i32
    return %c0_i32, %c0_i32_0 : i32, i32
  }
  func.func @transform_2(%arg0: i32) -> (i32, i32) {
    %c0_i32 = arith.constant 0 : i32
    %c0_i32_0 = arith.constant 0 : i32
    %c0_i32_1 = arith.constant 0 : i32
    return %c0_i32, %c0_i32_0 : i32, i32
  }
  func.func @transform_3(%arg0: i32) -> (i32, i32) {
    %c0_i32 = arith.constant 0 : i32
    %c0_i32_0 = arith.constant 0 : i32
    %c0_i32_1 = arith.constant 0 : i32
    return %c0_i32, %c0_i32_0 : i32, i32
  }
  func.func @transform_4(%arg0: i32) -> (i32, i32) {
    %c0_i32 = arith.constant 0 : i32
    %c0_i32_0 = arith.constant 0 : i32
    %c0_i32_1 = arith.constant 0 : i32
    return %c0_i32, %c0_i32_0 : i32, i32
  }
  func.func @transform_5(%arg0: i32) -> (i32, i32) {
    %c0_i32 = arith.constant 0 : i32
    %c0_i32_0 = arith.constant 0 : i32
    return %arg0, %c0_i32 : i32, i32
  }
}

</mosaic_0001>

<bundles_post_ra>
// kernel: classification_model_forward.1
= control target key start
LH: loop header
LB: loop body
LE: loop exit
PB: predicated region body
PF: predicated region fallthrough
CT: control target
= control target key end

     0   :  { %10 = vsyncpa [#allocation3], 0  ;;  %v45_v29 = vlaneseq  ;;  %v1240_v34 = vmov 1983009808   ;;  %vm1242_vm0 = vmmov 0   ;;  %s1544_s0 = inlined_call_operand.vmem [shape: f32[2,1024], index: 0, kind: input, shape index: {}]   ;;  %s1545_s1 = inlined_call_operand.vmem [shape: bf16[1024,128], index: 1, kind: input, shape index: {}]   ;;  %s1546_s2 = inlined_call_operand.vmem [shape: f32[1,128], index: 2, kind: input, shape index: {}]   ;;  %s1547_s3 = inlined_call_operand.vmem [shape: bf16[128,128], index: 3, kind: input, shape index: {}]   ;;  %s1548_s4 = inlined_call_operand.vmem [shape: f32[1,128], index: 4, kind: input, shape index: {}]   ;;  %s1549_s5 = inlined_call_operand.hbm [shape: f32[2,128], index: 5, kind: output, shape index: {}]  }
   0x1   :  { %v1132_v0 = vld [vmem:[%s1545_s1 + $0x40] sm:$0xff]   ;;  %v1136_v4 = vld [vmem:[%s1545_s1 + $0x48] sm:$0xff]   ;;  %v1140_v8 = vld [vmem:[%s1545_s1 + $0x50] sm:$0xff]   ;;  %v43_v35 = vunpack.c.l.s4 %v1240_v34 }
   0x2   :  { %v1133_v1 = vld [vmem:[%s1545_s1 + $0xc0] sm:$0xff]   ;;  %1009 = vmatprep.subr.bf16.mxu0 %v1132_v0  ;;  %v1137_v5 = vld [vmem:[%s1545_s1 + $0xc8] sm:$0xff]   ;;  %v1141_v9 = vld [vmem:[%s1545_s1 + $0xd0] sm:$0xff]   ;;  %v46_v36 = vshrl.u32 %v45_v29, 7 }
   0x3   :  { %v1134_v2 = vld [vmem:[%s1545_s1] sm:$0xff]   ;;  %1031 = vmatprep.subr.bf16.mxu1 %v1133_v1  ;;  %v1138_v6 = vld [vmem:[%s1545_s1 + $0x8] sm:$0xff]   ;;  %v1142_v10 = vld [vmem:[%s1545_s1 + $0x10] sm:$0xff]   ;;  %v44_v40 = vunpack.c.0.s8 %v43_v35 }
   0x4   :  { %v1135_v3 = vld [vmem:[%s1545_s1 + $0x80] sm:$0xff]   ;;  %1010 = vmatpush3.bf16.msra.mxu0 %v1134_v2  ;;  %v1139_v7 = vld [vmem:[%s1545_s1 + $0x88] sm:$0xff]   ;;  %v1143_v11 = vld [vmem:[%s1545_s1 + $0x90] sm:$0xff]  }
   0x5   :  { %1032 = vmatpush3.bf16.msra.mxu1 %v1135_v3  ;;  %1011 = vmatprep.subr.bf16.mxu0 %v1136_v4  ;;  %v1144_v12 = vld [vmem:[%s1545_s1 + $0x58] sm:$0xff]   ;;  %v1148_v16 = vld [vmem:[%s1545_s1 + $0x60] sm:$0xff]   ;;  %v1152_v20 = vld [vmem:[%s1545_s1 + $0x68] sm:$0xff]   ;;  %v1390_v43 = vsub.s32 %v44_v40, %v46_v36 }
   0x6   :  { %1033 = vmatprep.subr.bf16.mxu1 %v1137_v5  ;;  %v1145_v13 = vld [vmem:[%s1545_s1 + $0xd8] sm:$0xff]   ;;  %v1149_v17 = vld [vmem:[%s1545_s1 + $0xe0] sm:$0xff]   ;;  %v1153_v21 = vld [vmem:[%s1545_s1 + $0xe8] sm:$0xff]  }
   0x7   :  { %v1146_v14 = vld [vmem:[%s1545_s1 + $0x18] sm:$0xff]   ;;  %v1150_v18 = vld [vmem:[%s1545_s1 + $0x20] sm:$0xff]   ;;  %v1154_v22 = vld [vmem:[%s1545_s1 + $0x28] sm:$0xff]  }
   0x8   :  { %1012 = vmatpush3.bf16.msra.mxu0 %v1138_v6  ;;  %v1147_v15 = vld [vmem:[%s1545_s1 + $0x98] sm:$0xff]   ;;  %v1151_v19 = vld [vmem:[%s1545_s1 + $0xa0] sm:$0xff]   ;;  %v1155_v23 = vld [vmem:[%s1545_s1 + $0xa8] sm:$0xff]  }
   0x9   :  { %1034 = vmatpush3.bf16.msra.mxu1 %v1139_v7  ;;  %1013 = vmatprep.subr.bf16.mxu0 %v1140_v8  ;;  %v1156_v24 = vld [vmem:[%s1545_s1 + $0x70] sm:$0xff]   ;;  %v1160_v28 = vld [vmem:[%s1545_s1 + $0x78] sm:$0xff]   ;;  %v1170_v41 = vld [vmem:[%s1545_s1 + $0x140] sm:$0xff]  }
   0xa   :  { %1035 = vmatprep.subr.bf16.mxu1 %v1141_v9  ;;  %v1157_v25 = vld [vmem:[%s1545_s1 + $0xf0] sm:$0xff]   ;;  %v1161_v30 = vld [vmem:[%s1545_s1 + $0xf8] sm:$0xff]   ;;  %v1171_v42 = vld [vmem:[%s1545_s1 + $0x1c0] sm:$0xff]  }
   0xb   :  { %v1158_v26 = vld [vmem:[%s1545_s1 + $0x30] sm:$0xff]   ;;  %v1162_v31 = vld [vmem:[%s1545_s1 + $0x38] sm:$0xff]   ;;  %v1172_v52 = vld [vmem:[%s1545_s1 + $0x100] sm:$0xff]  }
   0xc   :  { %1014 = vmatpush3.bf16.msra.mxu0 %v1142_v10  ;;  %v1159_v27 = vld [vmem:[%s1545_s1 + $0xb0] sm:$0xff]   ;;  %v1163_v32 = vld [vmem:[%s1545_s1 + $0xb8] sm:$0xff]   ;;  %v1173_v53 = vld [vmem:[%s1545_s1 + $0x180] sm:$0xff]  }
   0xd   :  { %1036 = vmatpush3.bf16.msra.mxu1 %v1143_v11  ;;  %1015 = vmatprep.subr.bf16.mxu0 %v1144_v12  ;;  %v1164_v33 = vld [vmem:[%s1544_s0] ss:$16 sps:$4 sm:$0xff]   ;;  %v1168_v38 = vld [vmem:[%s1544_s0 + $0x4] ss:$16 sps:$4 sm:$0xff]   ;;  %v1174_v58 = vld [vmem:[%s1545_s1 + $0x148] sm:$0xff]  }
   0xe   :  { %1037 = vmatprep.subr.bf16.mxu1 %v1145_v13  ;;  %v1166_v37 = vld [vmem:[%s1544_s0 + $0x20] ss:$16 sps:$4 sm:$0xff]   ;;  %v1169_v39 = vld [vmem:[%s1544_s0 + $0x24] ss:$16 sps:$4 sm:$0xff]   ;;  %v48_v44 = vrot.slane %v1164_v33, %v1390_v43  ;;  %v55_v46 = vrot.slane %v1168_v38, %v1390_v43  ;;  %v1175_v59 = vld [vmem:[%s1545_s1 + $0x1c8] sm:$0xff]  }
   0xf   :  { %v62_v45 = vrot.slane %v1166_v37, %v1390_v43  ;;  %v69_v47 = vrot.slane %v1169_v39, %v1390_v43  ;;  %v1176_v60 = vld [vmem:[%s1545_s1 + $0x108] sm:$0xff]   ;;  %v1178_v62 = vld [vmem:[%s1545_s1 + $0x150] sm:$0xff]   ;;  %v1182_v2 = vld [vmem:[%s1545_s1 + $0x158] sm:$0xff]   ;;  %v1241_v39 = vmov 0.0  }
  0x10   :  { %1016 = vmatpush3.bf16.msra.mxu0 %v1146_v14  ;;  %v1177_v61 = vld [vmem:[%s1545_s1 + $0x188] sm:$0xff]   ;;  %v1179_v63 = vld [vmem:[%s1545_s1 + $0x1d0] sm:$0xff]   ;;  %v1183_v3 = vld [vmem:[%s1545_s1 + $0x1d8] sm:$0xff]  }
  0x11   :  { %1038 = vmatpush3.bf16.msra.mxu1 %v1147_v15  ;;  %1017 = vmatprep.subr.bf16.mxu0 %v1148_v16  ;;  %v71_v48 = vcombine.high %v48_v44, %v62_v45  ;;  %v73_v49 = vcombine.high %v55_v46, %v69_v47  ;;  %v70_v50 = vcombine.low %v48_v44, %v62_v45  ;;  %v1180_v0 = vld [vmem:[%s1545_s1 + $0x110] sm:$0xff]   ;;  %v1184_v4 = vld [vmem:[%s1545_s1 + $0x118] sm:$0xff]   ;;  %v1186_v6 = vld [vmem:[%s1545_s1 + $0x160] sm:$0xff]  }
  0x12   :  { %1039 = vmatprep.subr.bf16.mxu1 %v1149_v17  ;;  %v72_v51 = vcombine.low %v55_v46, %v69_v47  ;;  %v1181_v1 = vld [vmem:[%s1545_s1 + $0x190] sm:$0xff]   ;;  %v1185_v5 = vld [vmem:[%s1545_s1 + $0x198] sm:$0xff]   ;;  %v1187_v7 = vld [vmem:[%s1545_s1 + $0x1e0] sm:$0xff]  }
  0x13   :  { %v119_v54 = vpack.c.bf16 %v71_v48, %v71_v48  ;;  %v121_v55 = vpack.c.bf16 %v73_v49, %v73_v49  ;;  %v118_v56 = vpack.c.bf16 %v70_v50, %v70_v50  ;;  %v1188_v8 = vld [vmem:[%s1545_s1 + $0x120] sm:$0xff]   ;;  %v1190_v10 = vld [vmem:[%s1545_s1 + $0x168] sm:$0xff]   ;;  %v1194_v14 = vld [vmem:[%s1545_s1 + $0x170] sm:$0xff]  }
  0x14   :  { %1018 = vmatpush3.bf16.msra.mxu0 %v1150_v18  ;;  %v120_v57 = vpack.c.bf16 %v72_v51, %v72_v51  ;;  %v1189_v9 = vld [vmem:[%s1545_s1 + $0x1a0] sm:$0xff]   ;;  %v1191_v11 = vld [vmem:[%s1545_s1 + $0x1e8] sm:$0xff]   ;;  %v1195_v15 = vld [vmem:[%s1545_s1 + $0x1f0] sm:$0xff]  }
  0x15   :  { %1040 = vmatpush3.bf16.msra.mxu1 %v1151_v19  ;;  %1019 = vmatprep.subr.bf16.mxu0 %v1152_v20  ;;  %v1192_v12 = vld [vmem:[%s1545_s1 + $0x128] sm:$0xff]   ;;  %v1196_v16 = vld [vmem:[%s1545_s1 + $0x130] sm:$0xff]   ;;  %v1198_v18 = vld [vmem:[%s1545_s1 + $0x178] sm:$0xff]  }
  0x16   :  { %1041 = vmatprep.subr.bf16.mxu1 %v1153_v21  ;;  %677 = vmatprep.mubr.bf16.mxu0 %v119_v54  ;;  %v1193_v13 = vld [vmem:[%s1545_s1 + $0x1a8] sm:$0xff]   ;;  %v1197_v17 = vld [vmem:[%s1545_s1 + $0x1b0] sm:$0xff]   ;;  %v1199_v19 = vld [vmem:[%s1545_s1 + $0x1f8] sm:$0xff]  }
  0x17   :  { %717 = vmatprep.mubr.bf16.mxu1 %v121_v55  ;;  %v1202_v20 = vld [vmem:[%s1544_s0 + $0x8] ss:$16 sps:$4 sm:$0xff]   ;;  %v1208_v38 = vld [vmem:[%s1547_s3] sm:$0xff]   ;;  %v1214_v45 = vld [vmem:[%s1547_s3 + $0x30] sm:$0xff]  }
  0x18   :  { %1020 = vmatpush3.bf16.msra.mxu0 %v1154_v22  ;;  %v1204_v21 = vld [vmem:[%s1544_s0 + $0x28] ss:$16 sps:$4 sm:$0xff]   ;;  %v935_v49 = vld [vmem:[%s1546_s2] ss:$0 sm:$0xff] }
  0x19   :  { %1042 = vmatpush3.bf16.msra.mxu1 %v1155_v23  ;;  %1021 = vmatprep.subr.bf16.mxu0 %v1156_v24  ;;  %v1200_v22 = vld [vmem:[%s1545_s1 + $0x138] sm:$0xff]   ;;  %v1209_v40 = vld [vmem:[%s1547_s3 + $0x8] sm:$0xff]  }
  0x1a   :  { %1043 = vmatprep.subr.bf16.mxu1 %v1157_v25  ;;  %v1201_v23 = vld [vmem:[%s1545_s1 + $0x1b8] sm:$0xff]   ;;  %v1213_v44 = vld [vmem:[%s1547_s3 + $0x28] sm:$0xff]  }
  0x1b   :  { %v1206_v24 = vld [vmem:[%s1544_s0 + $0xc] ss:$16 sps:$4 sm:$0xff]  }
  0x1c   :  { %1022 = vmatpush3.bf16.msra.mxu0 %v1158_v26  ;;  %v1207_v25 = vld [vmem:[%s1544_s0 + $0x2c] ss:$16 sps:$4 sm:$0xff]   ;;  %v84_v26 = vrot.slane %v1202_v20, %v1390_v43 }
  0x1d   :  { %1044 = vmatpush3.bf16.msra.mxu1 %v1159_v27  ;;  %1023 = vmatprep.subr.bf16.mxu0 %v1160_v28  ;;  %v98_v27 = vrot.slane %v1204_v21, %v1390_v43  ;;  %v91_v28 = vrot.slane %v1206_v24, %v1390_v43  ;;  %v105_v29 = vrot.slane %v1207_v25, %v1390_v43  ;;  %v1212_v43 = vld [vmem:[%s1547_s3 + $0x20] sm:$0xff]   ;;  %v1215_v46 = vld [vmem:[%s1547_s3 + $0x38] sm:$0xff]  }
  0x1e   :  { %1045 = vmatprep.subr.bf16.mxu1 %v1161_v30 }
  0x1f   :  { %v107_v30 = vcombine.high %v84_v26, %v98_v27  ;;  %v108_v33 = vcombine.low %v91_v28, %v105_v29 }
  0x20   :  { %1024 = vmatpush3.bf16.msra.mxu0 %v1162_v31  ;;  %v106_v31 = vcombine.low %v84_v26, %v98_v27 }
  0x21   :  { %1046 = vmatpush3.bf16.msra.mxu1 %v1163_v32  ;;  %1053 = vmatprep.subr.bf16.mxu0 %v1170_v41  ;;  %v109_v32 = vcombine.high %v91_v28, %v105_v29  ;;  %v123_v34 = vpack.c.bf16 %v107_v30, %v107_v30  ;;  %v124_v37 = vpack.c.bf16 %v108_v33, %v108_v33  ;;  %v1210_v41 = vld [vmem:[%s1547_s3 + $0x10] sm:$0xff]  }
  0x22   :  { %1075 = vmatprep.subr.bf16.mxu1 %v1171_v42  ;;  %v122_v35 = vpack.c.bf16 %v106_v31, %v106_v31  ;;  %v1211_v42 = vld [vmem:[%s1547_s3 + $0x18] sm:$0xff]  }
  0x23   :  { %678 = vmatmul.mubr.bf16.vlgmr.msra.gmra.mrb[0].mxu0 %v118_v56  ;;  %v125_v36 = vpack.c.bf16 %v109_v32, %v109_v32 }
  0x24   :  { %718 = vmatmul.mubr.bf16.vlgmr.msra.gmra.mrb[0].mxu1 %v120_v57  ;;  %1054 = vmatpush3.bf16.msra.mxu0 %v1172_v52 }
  0x25   :  { %1076 = vmatpush3.bf16.msra.mxu1 %v1173_v53  ;;  %1055 = vmatprep.subr.bf16.mxu0 %v1174_v58 }
  0x26   :  { %1077 = vmatprep.subr.bf16.mxu1 %v1175_v59  ;;  %757 = vmatprep.mubr.bf16.mxu0 %v123_v34 }
  0x27   :  { %797 = vmatprep.mubr.bf16.mxu1 %v125_v36 }
  0x28   :  { %1056 = vmatpush3.bf16.msra.mxu0 %v1176_v60 }
  0x29   :  { %1078 = vmatpush3.bf16.msra.mxu1 %v1177_v61  ;;  %1057 = vmatprep.subr.bf16.mxu0 %v1178_v62 }
  0x2a   :  { %1079 = vmatprep.subr.bf16.mxu1 %v1179_v63 }
  0x2c   :  { %1058 = vmatpush3.bf16.msra.mxu0 %v1180_v0 }
  0x2d   :  { %1080 = vmatpush3.bf16.msra.mxu1 %v1181_v1  ;;  %1059 = vmatprep.subr.bf16.mxu0 %v1182_v2 }
  0x2e   :  { %1081 = vmatprep.subr.bf16.mxu1 %v1183_v3 }
  0x30   :  { %1060 = vmatpush3.bf16.msra.mxu0 %v1184_v4 }
  0x31   :  { %1082 = vmatpush3.bf16.msra.mxu1 %v1185_v5  ;;  %1061 = vmatprep.subr.bf16.mxu0 %v1186_v6 }
  0x32   :  { %1083 = vmatprep.subr.bf16.mxu1 %v1187_v7 }
  0x34   :  { %1062 = vmatpush3.bf16.msra.mxu0 %v1188_v8 }
  0x35   :  { %1084 = vmatpush3.bf16.msra.mxu1 %v1189_v9  ;;  %1063 = vmatprep.subr.bf16.mxu0 %v1190_v10  ;;  %v1000_v10 = vld [vmem:[%s1548_s4] ss:$0 sm:$0xff] }
  0x36   :  { %1085 = vmatprep.subr.bf16.mxu1 %v1191_v11 }
  0x38   :  { %1064 = vmatpush3.bf16.msra.mxu0 %v1192_v12 }
  0x39   :  { %1086 = vmatpush3.bf16.msra.mxu1 %v1193_v13  ;;  %1065 = vmatprep.subr.bf16.mxu0 %v1194_v14 }
  0x3a   :  { %1087 = vmatprep.subr.bf16.mxu1 %v1195_v15 }
  0x3c   :  { %1066 = vmatpush3.bf16.msra.mxu0 %v1196_v16 }
  0x3d   :  { %1088 = vmatpush3.bf16.msra.mxu1 %v1197_v17  ;;  %1067 = vmatprep.subr.bf16.mxu0 %v1198_v18 }
  0x3e   :  { %1089 = vmatprep.subr.bf16.mxu1 %v1199_v19 }
  0x40   :  { %1068 = vmatpush3.bf16.msra.mxu0 %v1200_v22 }
  0x41   :  { %1090 = vmatpush3.bf16.msra.mxu1 %v1201_v23  ;;  %1106 = vmatprep.subr.bf16.mxu0 %v1241_v39 }
  0x43   :  { %758 = vmatmul.mubr.bf16.vlgmr.msra.gmra.mrb[4].mxu0 %v122_v35 }
  0x44   :  { %798 = vmatmul.mubr.bf16.vlgmr.msra.gmra.mrb[4].mxu1 %v124_v37  ;;  %1107 = vmatpush3.bf16.msra.mxu0 %v1208_v38 }
  0x45   :  { %1108 = vmatprep.subr.bf16.mxu0 %v1241_v39  ;;  %1122 = vmatprep.mubr.msk.bf16.mxu0 %vm1242_vm0, %v1241_v39 }
  0x48   :  { %1109 = vmatpush3.bf16.msra.mxu0 %v1209_v40 }
  0x49   :  { %1110 = vmatprep.subr.bf16.mxu0 %v1241_v39 }
  0x4c   :  { %1111 = vmatpush3.bf16.msra.mxu0 %v1210_v41 }
  0x4d   :  { %1112 = vmatprep.subr.bf16.mxu0 %v1241_v39 }
  0x50   :  { %1113 = vmatpush3.bf16.msra.mxu0 %v1211_v42 }
  0x51   :  { %1114 = vmatprep.subr.bf16.mxu0 %v1241_v39 }
  0x54   :  { %1115 = vmatpush3.bf16.msra.mxu0 %v1212_v43 }
  0x55   :  { %1116 = vmatprep.subr.bf16.mxu0 %v1241_v39 }
  0x58   :  { %1117 = vmatpush3.bf16.msra.mxu0 %v1213_v44 }
  0x59   :  { %1118 = vmatprep.subr.bf16.mxu0 %v1241_v39 }
  0x5c   :  { %1119 = vmatpush3.bf16.msra.mxu0 %v1214_v45 }
  0x5d   :  { %1120 = vmatprep.subr.bf16.mxu0 %v1241_v39 }
  0x60   :  { %1121 = vmatpush3.bf16.msra.mxu0 %v1215_v46 }
  0xf6   :  { %v1025_v47 = vpop.f32.mrb[0].mxu0 }
  0xf7   :  { %v1047_v48 = vpop.f32.mrb[0].mxu1  ;;  %v1026_v50 = vpop.f32.mrb[1].mxu0 }
  0xf8   :  { %v1048_v51 = vpop.f32.mrb[1].mxu1  ;;  %v1027_v52 = vadd.f32 %v1026_v50, %v1025_v47  ;;  %v1028_v54 = vpop.f32.mrb[2].mxu0 }
  0xf9   :  { %v1049_v53 = vadd.f32 %v1048_v51, %v1047_v48  ;;  %v1050_v55 = vpop.f32.mrb[2].mxu1  ;;  %v1029_v56 = vpop.f32.mrb[3].mxu0 }
  0xfa   :  { %v1051_v57 = vpop.f32.mrb[3].mxu1  ;;  %v680_v58 = vadd.f32 %v1027_v52, %v935_v49 }
  0xfc   :  { %v720_v59 = vadd.f32 %v1049_v53, %v680_v58 }
 0x116   :  { %v1069_v60 = vpop.f32.mrb[4].mxu0 }
 0x117   :  { %v1091_v61 = vpop.f32.mrb[4].mxu1  ;;  %v1070_v62 = vpop.f32.mrb[5].mxu0 }
 0x118   :  { %v1092_v63 = vpop.f32.mrb[5].mxu1  ;;  %v1071_v0 = vadd.f32 %v1070_v62, %v1069_v60  ;;  %v1072_v2 = vpop.f32.mrb[6].mxu0 }
 0x119   :  { %v1093_v1 = vadd.f32 %v1092_v63, %v1091_v61  ;;  %v1094_v3 = vpop.f32.mrb[6].mxu1  ;;  %v1073_v4 = vpop.f32.mrb[7].mxu0 }
 0x11a   :  { %v1095_v5 = vpop.f32.mrb[7].mxu1  ;;  %v760_v6 = vadd.f32 %v1071_v0, %v720_v59 }
 0x11c   :  { %v800_v7 = vadd.f32 %v1093_v1, %v760_v6 }
 0x11e   :  { %v805_v8 = vmax.f32 %v800_v7, 0.0 }
 0x120   :  { %v806_v9 = vpack.c.bf16 %v805_v8, %v805_v8 }
 0x122   :  { %1123 = vmatmul.mubr.bf16.vlgmr.msra.gmra.mrb[8].mxu0 %v806_v9 }
 0x1f5   :  { %v912_v11 = vpop.f32.mrb[8].mxu0 }
 0x1f6   :  { %v913_v12 = vadd.f32 %v1000_v10, %v912_v11  ;;  %v1124_v13 = vpop.f32.mrb[9].mxu0 }
 0x1f7   :  { %v915_v14 = vpop.f32.mrb[10].mxu0 }
 0x1f8   :  { %918 = vst [vmem:[#allocation2] sm:$0xff] %v913_v12  ;;  %v1125_v15 = vpop.f32.mrb[11].mxu0 }
 0x1f9   :  { %923 = vsyncadd [#allocation3], 96  ;;  %s1243_s28 = smov [#allocation2]  }
 0x1fa   :  { %s924_s29 = sshll.u32 %s1243_s28, 4  ;;  %s925_s29 = int_to_ptr.vmem [resolvable:$true] %s924_s29 }
 0x1fb   :  { %s1216_s30 = scalar_lea.vmem %s925_s29, 32  ;;  %s1220_s6 = scalar_lea.vmem %s925_s29, 128 }
 0x1fc   :  { %p1217_p0 = scmp.ne.s32.totalorder %s925_s29, %s1216_s30  ;;  %p1221_p1 = scmp.lt.s32.totalorder %s925_s29, %s925_s29 }
 0x1fd   :  { %p1222_p2 = scmp.lt.s32.totalorder %s1220_s6, %s1216_s30 }
 0x1ff   :  { %p1223_p3 = por %p1222_p2, %p1221_p1 }
 0x201   :  { %p1224_p4 = pnand %p1223_p3, %p1217_p0 }
 0x203   :  { %1227 = shalt.err (!%p1224_p4)
}
 0x204   :  { %s1228_s8 = scalar_lea.hbm %s1549_s5, 32 }
 0x205   :  { %p1229_p5 = scmp.ne.s32.totalorder %s1549_s5, %s1228_s8  ;;  %p1232_p6 = scmp.lt.u32.totalorder %s1228_s8, %s1549_s5 }
 0x207   :  { %p1234_p7 = pnand %p1232_p6, %p1229_p5 }
 0x209   :  { %1237 = shalt.err (!%p1234_p7)
}
 0x20a   :  { %s1244_s1 = smov 32   ;;  %s1245_s12 = smov 2  }
 0x20b   :  { %930 = dma.vmem_to_hbm [thread:$0]  %s925_s29, 32, %s1549_s5, [#allocation3], %s1244_s1, %s1244_s1, %s1245_s12  }
 0x20c   :  { %1238 = dma.done.wait [#allocation3], 128  }
 0x20d   :  { %1239 = vsyncadd [#allocation3], 4294967168 }
 0x20e   :  { %934 = vsyncpa [#allocation3], 1 }

</bundles_post_ra>
